<compile_context>
chip_gen: v5e
topology: v5e:2x2
jax: 0.10.0
libtpu: 0.0.40
codegen_flags: <defaults>
</compile_context>

<pallas_src>
import jax
import jax.numpy as jnp
from jax import lax
from jax.experimental import pallas as pl
from jax.experimental.pallas import tpu as pltpu

# ---- small, module-consistent sizes --------------------------------------
B = 2              # batch of videos
T = 4              # num_segments
C = 3              # RGB, new_length=1 -> sample_len = 3
H = W = 16
HW = H * W
N = B * T * HW     # 2048  (all frames' pixels, the lane dimension)
KH = KW = 3
K = C * KH * KW    # im2col patch length = 27
KA = K + 1         # +1 ones-row to carry the stem bias through the matmul
STEM = 16          # stem conv channels (stand-in backbone)
FEAT = 64          # feature_dim (stand-in for 2048)
NUM_CLASS = 10
NC_PAD = 128       # lane-dense padded class dimension


def _tsn_kernel(p_ref, cw_ref, avg_ref, pw_ref, pb_ref, fw_ref, fb_ref,
                cons_ref, out_ref):
    """Single grid step: all B*T segments of all videos processed together."""
    # ---- synthetic backbone, transposed (lane-dense) layout ------------------
    # stem conv as matmul + ReLU: (STEM, KA) @ (KA, N) -> (STEM, N); the last
    # column of cw holds the bias (matching ones-row in p), so no broadcast.
    h = jnp.maximum(
        jnp.dot(cw_ref[...], p_ref[...], preferred_element_type=jnp.float32),
        0.0)                                                       # (STEM, N)

    # Per-segment global-avg-pool, applied BEFORE pw (review item 1), as an NT
    # matmul contracting the dense 2048 lane dim:
    # (BT, N) x (STEM, N)^T -> (BT, STEM).  avg already contains 1/HW.
    pooled = lax.dot_general(avg_ref[...], h,
                             dimension_numbers=(((1,), (1,)), ((), ())),
                             preferred_element_type=jnp.float32)   # (BT, STEM)

    f = jnp.maximum(
        jnp.dot(pooled, pw_ref[...], preferred_element_type=jnp.float32)
        + pb_ref[...], 0.0)                                        # (BT, FEAT)

    # ---- TSN head: dropout (identity at eval) -> new_fc, batched over B*T ----
    logits = jnp.dot(f, fw_ref[...],
                     preferred_element_type=jnp.float32) + fb_ref[...]  # (BT, NC_PAD)

    # ---- avg consensus over T + squeeze(1): (B, BT) @ (BT, NC_PAD) ----------
    # cons already contains 1/T; single lane-dense store of the whole output.
    out_ref[...] = jnp.dot(cons_ref[...], logits,
                           preferred_element_type=jnp.float32)     # (B, NC_PAD)


@jax.jit
def tsn_forward(x, cw, cb, pw, pb, fw, fb):
    """x: (B, T*C, H, W) float32 NCHW -> (B, NUM_CLASS) float32."""
    frames = x.reshape(B * T, C, H, W)
    # im2col glue (same jit as the kernel so XLA fuses/overlaps it):
    # (B*T, K, H, W) -> transposed lane-dense (K, N), plus a ones-row for bias.
    patches = lax.conv_general_dilated_patches(frames, (KH, KW), (1, 1), 'SAME')
    p_t = patches.transpose(1, 0, 2, 3).reshape(K, N).astype(jnp.float32)
    p_aug = jnp.concatenate([p_t, jnp.ones((1, N), jnp.float32)], axis=0)  # (KA, N)

    # stem weights transposed, bias appended as the last column
    cw_aug = jnp.concatenate([cw.T, cb.reshape(STEM, 1)], axis=1)          # (STEM, KA)

    # precomputed pooling / consensus matrices (1/HW and 1/T folded in)
    avg = jnp.kron(jnp.eye(B * T, dtype=jnp.float32),
                   jnp.ones((1, HW), jnp.float32)) * (1.0 / HW)            # (BT, N)
    cons = jnp.kron(jnp.eye(B, dtype=jnp.float32),
                    jnp.ones((1, T), jnp.float32)) * (1.0 / T)             # (B, BT)

    # new_fc padded to a lane-dense 128-wide class dim (zero padding => padded
    # logits columns are exactly zero; wrapper slices them off).
    fw_pad = jnp.zeros((FEAT, NC_PAD), jnp.float32).at[:, :NUM_CLASS].set(fw)
    fb_pad = jnp.zeros((1, NC_PAD), jnp.float32).at[:, :NUM_CLASS].set(fb)

    flops = 2 * (STEM * KA * N            # stem conv matmul
                 + B * T * N * STEM       # per-segment GAP matmul
                 + B * T * STEM * FEAT    # pw matmul (after pooling)
                 + B * T * FEAT * NC_PAD  # new_fc head
                 + B * B * T * NC_PAD)    # consensus
    bytes_accessed = 4 * (p_aug.size + cw_aug.size + avg.size + pw.size
                          + pb.size + fw_pad.size + fb_pad.size + cons.size
                          + B * NC_PAD)
    cost = pl.CostEstimate(flops=flops, transcendentals=0,
                           bytes_accessed=bytes_accessed)

    out = pl.pallas_call(
        _tsn_kernel,
        out_shape=jax.ShapeDtypeStruct((B, NC_PAD), jnp.float32),
        grid=(1,),
        in_specs=[
            pl.BlockSpec((KA, N), lambda i: (0, 0)),          # patches (lane-dense)
            pl.BlockSpec((STEM, KA), lambda i: (0, 0)),       # stem W|b
            pl.BlockSpec((B * T, N), lambda i: (0, 0)),       # pooling matrix
            pl.BlockSpec((STEM, FEAT), lambda i: (0, 0)),     # pw
            pl.BlockSpec((1, FEAT), lambda i: (0, 0)),        # pb
            pl.BlockSpec((FEAT, NC_PAD), lambda i: (0, 0)),   # new_fc W (padded)
            pl.BlockSpec((1, NC_PAD), lambda i: (0, 0)),      # new_fc b (padded)
            pl.BlockSpec((B, B * T), lambda i: (0, 0)),       # consensus matrix
        ],
        out_specs=pl.BlockSpec((B, NC_PAD), lambda i: (0, 0)),
        compiler_params=pltpu.CompilerParams(
            dimension_semantics=("arbitrary",)),
        cost_estimate=cost,
    )(p_aug, cw_aug, avg, pw, pb, fw_pad, fb_pad, cons)
    return out[:, :NUM_CLASS]


def tsn_reference(x, cw, cb, pw, pb, fw, fb):
    """Pure-JAX reference with identical math for correctness checking."""
    frames = x.reshape(B * T, C, H, W)
    patches = lax.conv_general_dilated_patches(frames, (KH, KW), (1, 1), 'SAME')
    patches = patches.transpose(0, 2, 3, 1).reshape(B * T, HW, K).astype(jnp.float32)
    h = jnp.maximum(jnp.einsum('npk,ks->nps', patches, cw) + cb, 0.0)
    pooled = jnp.mean(h, axis=1)                         # (B*T, STEM)  GAP
    f = jnp.maximum(pooled @ pw + pb, 0.0)               # (B*T, FEAT)
    logits = f @ fw + fb                                 # (B*T, NUM_CLASS)
    logits = logits.reshape(B, T, NUM_CLASS)
    return jnp.mean(logits, axis=1)                      # avg consensus, squeeze(1)


if __name__ == "__main__":
    key = jax.random.PRNGKey(0)
    kx, k1, k2, k3 = jax.random.split(key, 4)

    # deterministic parameters (synthetic backbone + TSN head init)
    cw = 0.05 * jax.random.normal(k1, (K, STEM), dtype=jnp.float32)
    cb = jnp.zeros((1, STEM), dtype=jnp.float32)
    pw = 0.05 * jax.random.normal(k2, (STEM, FEAT), dtype=jnp.float32)
    pb = jnp.zeros((1, FEAT), dtype=jnp.float32)
    # new_fc: normal_(weight, 0, 0.001); constant_(bias, 0)
    fw = 0.001 * jax.random.normal(k3, (FEAT, NUM_CLASS), dtype=jnp.float32)
    fb = jnp.zeros((1, NUM_CLASS), dtype=jnp.float32)

    # input: (batch, num_segments * 3, H, W), NCHW like PyTorch
    x = jax.random.normal(kx, (B, T * C, H, W), dtype=jnp.float32)

    out = jax.block_until_ready(tsn_forward(x, cw, cb, pw, pb, fw, fb))
    ref = tsn_reference(x, cw, cb, pw, pb, fw, fb)

    assert out.shape == (B, NUM_CLASS)
    assert jnp.allclose(out, ref, atol=1e-5, rtol=1e-5)
    print("KERNEL_OK")
</pallas_src>

<mosaic_0001>
module attributes {stable_mosaic.version = 11 : i64} {
  func.func @_tsn_kernel(%arg0: i32, %arg1: memref<28x2048xf32, #tpu.memory_space<vmem>>, %arg2: memref<16x28xf32, #tpu.memory_space<vmem>>, %arg3: memref<8x2048xf32, #tpu.memory_space<vmem>>, %arg4: memref<16x64xf32, #tpu.memory_space<vmem>>, %arg5: memref<1x64xf32, #tpu.memory_space<vmem>>, %arg6: memref<64x128xf32, #tpu.memory_space<vmem>>, %arg7: memref<1x128xf32, #tpu.memory_space<vmem>>, %arg8: memref<2x8xf32, #tpu.memory_space<vmem>>, %arg9: memref<2x128xf32, #tpu.memory_space<vmem>>) attributes {dimension_semantics = [#tpu.dimension_semantics<arbitrary>], iteration_bounds = array<i64: 1>, scalar_prefetch = 0 : i64, scratch_operands = 0 : i64, tpu.core_type = #tpu.core_type<tc>, window_params = [{pipeline_mode = #tpu.pipeline_mode<synchronous>, transform_indices = @transform_0, window_bounds = array<i64: 28, 2048>}, {pipeline_mode = #tpu.pipeline_mode<synchronous>, transform_indices = @transform_1, window_bounds = array<i64: 16, 28>}, {pipeline_mode = #tpu.pipeline_mode<synchronous>, transform_indices = @transform_2, window_bounds = array<i64: 8, 2048>}, {pipeline_mode = #tpu.pipeline_mode<synchronous>, transform_indices = @transform_3, window_bounds = array<i64: 16, 64>}, {pipeline_mode = #tpu.pipeline_mode<synchronous>, transform_indices = @transform_4, window_bounds = array<i64: 1, 64>}, {pipeline_mode = #tpu.pipeline_mode<synchronous>, transform_indices = @transform_5, window_bounds = array<i64: 64, 128>}, {pipeline_mode = #tpu.pipeline_mode<synchronous>, transform_indices = @transform_6, window_bounds = array<i64: 1, 128>}, {pipeline_mode = #tpu.pipeline_mode<synchronous>, transform_indices = @transform_7, window_bounds = array<i64: 2, 8>}, {pipeline_mode = #tpu.pipeline_mode<synchronous>, transform_indices = @transform_8, window_bounds = array<i64: 2, 128>}]} {
    %c0 = arith.constant 0 : index
    %c0_0 = arith.constant 0 : index
    %0 = vector.load %arg2[%c0, %c0_0] : memref<16x28xf32, #tpu.memory_space<vmem>>, vector<16x28xf32>
    %c0_1 = arith.constant 0 : index
    %c0_2 = arith.constant 0 : index
    %1 = vector.load %arg1[%c0_1, %c0_2] : memref<28x2048xf32, #tpu.memory_space<vmem>>, vector<28x2048xf32>
    %cst = arith.constant dense<0.000000e+00> : vector<16x2048xf32>
    %2 = tpu.matmul %0, %1, %cst {dimension_numbers = #tpu.dot_dimension_numbers<[1], [0], [0], [1], [0, 0, 1, 1], [], []>} : vector<16x28xf32>, vector<28x2048xf32>, vector<16x2048xf32> -> vector<16x2048xf32>
    %cst_3 = arith.constant 0.000000e+00 : f32
    %3 = vector.broadcast %cst_3 : f32 to vector<16x2048xf32>
    %4 = arith.maximumf %2, %3 : vector<16x2048xf32>
    %c0_4 = arith.constant 0 : index
    %c0_5 = arith.constant 0 : index
    %5 = vector.load %arg3[%c0_4, %c0_5] : memref<8x2048xf32, #tpu.memory_space<vmem>>, vector<8x2048xf32>
    %cst_6 = arith.constant dense<0.000000e+00> : vector<8x16xf32>
    %6 = tpu.matmul %5, %4, %cst_6 {dimension_numbers = #tpu.dot_dimension_numbers<[1], [1], [0], [0], [0, 0, 1, 0], [], []>} : vector<8x2048xf32>, vector<16x2048xf32>, vector<8x16xf32> -> vector<8x16xf32>
    %c0_7 = arith.constant 0 : index
    %c0_8 = arith.constant 0 : index
    %7 = vector.load %arg4[%c0_7, %c0_8] : memref<16x64xf32, #tpu.memory_space<vmem>>, vector<16x64xf32>
    %cst_9 = arith.constant dense<0.000000e+00> : vector<8x64xf32>
    %8 = tpu.matmul %6, %7, %cst_9 {dimension_numbers = #tpu.dot_dimension_numbers<[1], [0], [0], [1], [0, 0, 1, 1], [], []>} : vector<8x16xf32>, vector<16x64xf32>, vector<8x64xf32> -> vector<8x64xf32>
    %c0_10 = arith.constant 0 : index
    %c0_11 = arith.constant 0 : index
    %9 = vector.load %arg5[%c0_10, %c0_11] : memref<1x64xf32, #tpu.memory_space<vmem>>, vector<1x64xf32>
    %10 = vector.broadcast %9 : vector<1x64xf32> to vector<8x64xf32>
    %11 = arith.addf %8, %10 : vector<8x64xf32>
    %cst_12 = arith.constant 0.000000e+00 : f32
    %12 = vector.broadcast %cst_12 : f32 to vector<8x64xf32>
    %13 = arith.maximumf %11, %12 : vector<8x64xf32>
    %c0_13 = arith.constant 0 : index
    %c0_14 = arith.constant 0 : index
    %14 = vector.load %arg6[%c0_13, %c0_14] : memref<64x128xf32, #tpu.memory_space<vmem>>, vector<64x128xf32>
    %cst_15 = arith.constant dense<0.000000e+00> : vector<8x128xf32>
    %15 = tpu.matmul %13, %14, %cst_15 {dimension_numbers = #tpu.dot_dimension_numbers<[1], [0], [0], [1], [0, 0, 1, 1], [], []>} : vector<8x64xf32>, vector<64x128xf32>, vector<8x128xf32> -> vector<8x128xf32>
    %c0_16 = arith.constant 0 : index
    %c0_17 = arith.constant 0 : index
    %16 = vector.load %arg7[%c0_16, %c0_17] : memref<1x128xf32, #tpu.memory_space<vmem>>, vector<1x128xf32>
    %17 = vector.broadcast %16 : vector<1x128xf32> to vector<8x128xf32>
    %18 = arith.addf %15, %17 : vector<8x128xf32>
    %c0_18 = arith.constant 0 : index
    %c0_19 = arith.constant 0 : index
    %19 = vector.load %arg8[%c0_18, %c0_19] : memref<2x8xf32, #tpu.memory_space<vmem>>, vector<2x8xf32>
    %cst_20 = arith.constant dense<0.000000e+00> : vector<2x128xf32>
    %20 = tpu.matmul %19, %18, %cst_20 {dimension_numbers = #tpu.dot_dimension_numbers<[1], [0], [0], [1], [0, 0, 1, 1], [], []>} : vector<2x8xf32>, vector<8x128xf32>, vector<2x128xf32> -> vector<2x128xf32>
    %c0_21 = arith.constant 0 : index
    %c0_22 = arith.constant 0 : index
    %21 = vector.load %arg9[%c0_21, %c0_22] : memref<2x128xf32, #tpu.memory_space<vmem>>, vector<2x128xf32>
    tpu.vector_store %arg9[%c0_21, %c0_22], %20 {strides = array<i32>} : memref<2x128xf32, #tpu.memory_space<vmem>>, vector<2x128xf32>,
    return
  }
  func.func @transform_0(%arg0: i32) -> (i32, i32) {
    %c0_i32 = arith.constant 0 : i32
    %c0_i32_0 = arith.constant 0 : i32
    %c0_i32_1 = arith.constant 0 : i32
    return %c0_i32, %c0_i32_0 : i32, i32
  }
  func.func @transform_1(%arg0: i32) -> (i32, i32) {
    %c0_i32 = arith.constant 0 : i32
    %c0_i32_0 = arith.constant 0 : i32
    %c0_i32_1 = arith.constant 0 : i32
    return %c0_i32, %c0_i32_0 : i32, i32
  }
  func.func @transform_2(%arg0: i32) -> (i32, i32) {
    %c0_i32 = arith.constant 0 : i32
    %c0_i32_0 = arith.constant 0 : i32
    %c0_i32_1 = arith.constant 0 : i32
    return %c0_i32, %c0_i32_0 : i32, i32
  }
  func.func @transform_3(%arg0: i32) -> (i32, i32) {
    %c0_i32 = arith.constant 0 : i32
    %c0_i32_0 = arith.constant 0 : i32
    %c0_i32_1 = arith.constant 0 : i32
    return %c0_i32, %c0_i32_0 : i32, i32
  }
  func.func @transform_4(%arg0: i32) -> (i32, i32) {
    %c0_i32 = arith.constant 0 : i32
    %c0_i32_0 = arith.constant 0 : i32
    %c0_i32_1 = arith.constant 0 : i32
    return %c0_i32, %c0_i32_0 : i32, i32
  }
  func.func @transform_5(%arg0: i32) -> (i32, i32) {
    %c0_i32 = arith.constant 0 : i32
    %c0_i32_0 = arith.constant 0 : i32
    %c0_i32_1 = arith.constant 0 : i32
    return %c0_i32, %c0_i32_0 : i32, i32
  }
  func.func @transform_6(%arg0: i32) -> (i32, i32) {
    %c0_i32 = arith.constant 0 : i32
    %c0_i32_0 = arith.constant 0 : i32
    %c0_i32_1 = arith.constant 0 : i32
    return %c0_i32, %c0_i32_0 : i32, i32
  }
  func.func @transform_7(%arg0: i32) -> (i32, i32) {
    %c0_i32 = arith.constant 0 : i32
    %c0_i32_0 = arith.constant 0 : i32
    %c0_i32_1 = arith.constant 0 : i32
    return %c0_i32, %c0_i32_0 : i32, i32
  }
  func.func @transform_8(%arg0: i32) -> (i32, i32) {
    %c0_i32 = arith.constant 0 : i32
    %c0_i32_0 = arith.constant 0 : i32
    %c0_i32_1 = arith.constant 0 : i32
    return %c0_i32, %c0_i32_0 : i32, i32
  }
}

</mosaic_0001>

<bundles_post_ra>
// kernel: tsn_forward.1
= control target key start
LH: loop header
LB: loop body
LE: loop exit
PB: predicated region body
PF: predicated region fallthrough
CT: control target
= control target key end

     0   :  { %vm103_vm0 = vcmask 1043456   ;;  %vm96_vm1 = vcmask 228352   ;;  %s1500_s0 = inlined_call_operand.vmem [shape: f32[28,2048], index: 0, kind: input, shape index: {}]   ;;  %s1501_s1 = inlined_call_operand.vmem [shape: f32[16,28], index: 1, kind: input, shape index: {}]   ;;  %s1502_s2 = inlined_call_operand.vmem [shape: f32[8,2048], index: 2, kind: input, shape index: {}]   ;;  %s1503_s3 = inlined_call_operand.vmem [shape: f32[16,64], index: 3, kind: input, shape index: {}]   ;;  %s1504_s4 = inlined_call_operand.vmem [shape: f32[1,64], index: 4, kind: input, shape index: {}]   ;;  %s1505_s5 = inlined_call_operand.vmem [shape: f32[64,128], index: 5, kind: input, shape index: {}]   ;;  %s1506_s6 = inlined_call_operand.vmem [shape: f32[1,128], index: 6, kind: input, shape index: {}]   ;;  %s1507_s7 = inlined_call_operand.vmem [shape: f32[2,8], index: 7, kind: input, shape index: {}]   ;;  %s1508_s8 = inlined_call_operand.hbm [shape: f32[2,128], index: 8, kind: output, shape index: {}]  }
   0x1   :  { %v81_v0 = vld [vmem:[%s1500_s0 + $0x188] sm:$0xf]  ;;  %v82_v1 = vld [vmem:[%s1500_s0 + $0x190] sm:$0xf]  ;;  %v80_v3 = vld [vmem:[%s1500_s0 + $0x180] sm:$0xf] }
   0x2   :  { %v65_v2 = vld [vmem:[%s1500_s0 + $0x108] sm:$0xff]  ;;  %1048 = vmatpush.msk.msra.mxu3 %vm103_vm0, %v81_v0  ;;  %1003 = vmatpush.msk.msra.mxu2 %vm103_vm0, %v82_v1  ;;  %v66_v4 = vld [vmem:[%s1500_s0 + $0x110] sm:$0xff]  ;;  %v64_v5 = vld [vmem:[%s1500_s0 + $0x100] sm:$0xff] }
   0x3   :  { %997 = vmatpush.msk.msra.mxu0 %vm103_vm0, %v80_v3  ;;  %v49_v6 = vld [vmem:[%s1500_s0 + $0x88] sm:$0xff]  ;;  %v50_v7 = vld [vmem:[%s1500_s0 + $0x90] sm:$0xff]  ;;  %1000 = vmatpush.msk.msra.mxu1 %vm103_vm0, %v81_v0  ;;  %v48_v8 = vld [vmem:[%s1500_s0 + $0x80] sm:$0xff] }
   0x4   :  { %1049 = vmatpush.msra.mxu3 %v65_v2  ;;  %211 = vmatpush.msra.mxu2 %v66_v4  ;;  %v33_v9 = vld [vmem:[%s1500_s0 + $0x8] sm:$0xff]  ;;  %v34_v10 = vld [vmem:[%s1500_s0 + $0x10] sm:$0xff]  ;;  %v1172_v12 = vld [vmem:[%s1501_s1] sm:$0xff] }
   0x5   :  { %165 = vmatpush.msra.mxu0 %v64_v5  ;;  %188 = vmatpush.msra.mxu1 %v65_v2  ;;  %v1167_v11 = vld [vmem:[%s1501_s1 + $0x8] sm:$0xff]  ;;  %v32_v13 = vld [vmem:[%s1500_s0] sm:$0xff]  ;;  %v83_v14 = vld [vmem:[%s1500_s0 + $0x198] sm:$0xf] }
   0x6   :  { %1050 = vmatpush.msra.mxu3 %v49_v6  ;;  %212 = vmatpush.msra.mxu2 %v50_v7  ;;  %v86_v15 = vld [vmem:[%s1500_s0 + $0x1b0] sm:$0xf]  ;;  %v67_v16 = vld [vmem:[%s1500_s0 + $0x118] sm:$0xff]  ;;  %v84_v17 = vld [vmem:[%s1500_s0 + $0x1a0] sm:$0xf] }
   0x7   :  { %166 = vmatpush.msra.mxu0 %v48_v8  ;;  %189 = vmatpush.msra.mxu1 %v49_v6  ;;  %v70_v18 = vld [vmem:[%s1500_s0 + $0x130] sm:$0xff]  ;;  %v51_v19 = vld [vmem:[%s1500_s0 + $0x98] sm:$0xff]  ;;  %v68_v20 = vld [vmem:[%s1500_s0 + $0x120] sm:$0xff] }
   0x8   :  { %1051 = vmatpush.msra.mxu3 %v33_v9  ;;  %213 = vmatpush.msra.mxu2 %v34_v10  ;;  %v85_v21 = vld [vmem:[%s1500_s0 + $0x1a8] sm:$0xf]  ;;  %v35_v22 = vld [vmem:[%s1500_s0 + $0x18] sm:$0xff]  ;;  %v54_v23 = vld [vmem:[%s1500_s0 + $0xb0] sm:$0xff] }
   0x9   :  { %1002 = vmatmul.msk.f32.vlgmr.msra.gmra.mxu3 %vm96_vm1, %v1167_v11  ;;  %1004 = vmatmul.msk.f32.vlgmr.msra.gmra.mxu2 %vm96_vm1, %v1172_v12  ;;  %v52_v24 = vld [vmem:[%s1500_s0 + $0xa0] sm:$0xff]  ;;  %v69_v25 = vld [vmem:[%s1500_s0 + $0x128] sm:$0xff]  ;;  %v38_v26 = vld [vmem:[%s1500_s0 + $0x30] sm:$0xff] }
   0xa   :  { %167 = vmatpush.msra.mxu0 %v32_v13  ;;  %1006 = vmatpush.msk.msrb.mxu3 %vm103_vm0, %v83_v14  ;;  %v87_v27 = vld [vmem:[%s1500_s0 + $0x1b8] sm:$0xf]  ;;  %v36_v28 = vld [vmem:[%s1500_s0 + $0x20] sm:$0xff]  ;;  %v53_v29 = vld [vmem:[%s1500_s0 + $0xa8] sm:$0xff] }
   0xb   :  { %998 = vmatmul.msk.f32.vlgmr.msra.gmra.mxu0 %vm96_vm1, %v1172_v12  ;;  %1015 = vmatpush.msk.msrb.mxu2 %vm103_vm0, %v86_v15  ;;  %v90_v30 = vld [vmem:[%s1500_s0 + $0x1d0] sm:$0xf] }
   0xc   :  { %234 = vmatpush.msrb.mxu3 %v67_v16  ;;  %190 = vmatpush.msra.mxu1 %v33_v9 }
   0xd   :  { %1009 = vmatpush.msk.msrb.mxu0 %vm103_vm0, %v84_v17  ;;  %303 = vmatpush.msrb.mxu2 %v70_v18 }
   0xe   :  { %235 = vmatpush.msrb.mxu3 %v51_v19  ;;  %1001 = vmatmul.msk.f32.vlgmr.msra.gmra.mxu1 %vm96_vm1, %v1172_v12 }
   0xf   :  { %257 = vmatpush.msrb.mxu0 %v68_v20  ;;  %1012 = vmatpush.msk.msrb.mxu1 %vm103_vm0, %v85_v21 }
  0x10   :  { %236 = vmatpush.msrb.mxu3 %v35_v22  ;;  %304 = vmatpush.msrb.mxu2 %v54_v23 }
  0x11   :  { %1005 = vmatmul.msk.f32.gmra.mxu2 %vm96_vm1, %v1167_v11  ;;  %1007 = vmatmul.msk.f32.vlgmr.msrb.gmra.mxu3 %vm96_vm1, %v1172_v12 }
  0x12   :  { %258 = vmatpush.msrb.mxu0 %v52_v24  ;;  %280 = vmatpush.msrb.mxu1 %v69_v25 }
  0x13   :  { %13 = vsyncpa [#allocation3], 0  ;;  %999 = vmatmul.msk.f32.gmra.mxu0 %vm96_vm1, %v1167_v11  ;;  %305 = vmatpush.msrb.mxu2 %v38_v26  ;;  %v71_v31 = vld [vmem:[%s1500_s0 + $0x138] sm:$0xff]  ;;  %v88_v32 = vld [vmem:[%s1500_s0 + $0x1c0] sm:$0xf]  ;;  %vm894_vm2 = vcmask 130048  }
  0x14   :  { %1018 = vmatpush.msk.msra.mxu3 %vm103_vm0, %v87_v27  ;;  %259 = vmatpush.msrb.mxu0 %v36_v28  ;;  %v37_v33 = vld [vmem:[%s1500_s0 + $0x28] sm:$0xff]  ;;  %v74_v34 = vld [vmem:[%s1500_s0 + $0x150] sm:$0xff]  ;;  %v55_v35 = vld [vmem:[%s1500_s0 + $0xb8] sm:$0xff]  ;;  %vm931_vm3 = vcmask 523264   ;;  %vm956_vm4 = vcmask 64512  }
  0x15   :  { %281 = vmatpush.msrb.mxu1 %v53_v29  ;;  %1027 = vmatpush.msk.msra.mxu2 %vm103_vm0, %v90_v30  ;;  %v39_v36 = vld [vmem:[%s1500_s0 + $0x38] sm:$0xff]  ;;  %v72_v37 = vld [vmem:[%s1500_s0 + $0x140] sm:$0xff]  ;;  %v89_v38 = vld [vmem:[%s1500_s0 + $0x1c8] sm:$0xf] }
  0x16   :  { %326 = vmatpush.msra.mxu3 %v71_v31  ;;  %1021 = vmatpush.msk.msra.mxu0 %vm103_vm0, %v88_v32  ;;  %v58_v39 = vld [vmem:[%s1500_s0 + $0xd0] sm:$0xff]  ;;  %v56_v40 = vld [vmem:[%s1500_s0 + $0xc0] sm:$0xff]  ;;  %v73_v41 = vld [vmem:[%s1500_s0 + $0x148] sm:$0xff] }
  0x17   :  { %282 = vmatpush.msrb.mxu1 %v37_v33  ;;  %395 = vmatpush.msra.mxu2 %v74_v34  ;;  %v91_v42 = vld [vmem:[%s1500_s0 + $0x1d8] sm:$0xf]  ;;  %v42_v43 = vld [vmem:[%s1500_s0 + $0x50] sm:$0xff]  ;;  %v40_v44 = vld [vmem:[%s1500_s0 + $0x40] sm:$0xff] }
  0x18   :  { %1013 = vmatmul.msk.f32.vlgmr.msrb.gmra.mxu1 %vm96_vm1, %v1172_v12  ;;  %327 = vmatpush.msra.mxu3 %v55_v35  ;;  %v57_v45 = vld [vmem:[%s1500_s0 + $0xc8] sm:$0xff]  ;;  %v75_v46 = vld [vmem:[%s1500_s0 + $0x158] sm:$0xff]  ;;  %v94_v47 = vld [vmem:[%s1500_s0 + $0x1f0] sm:$0xf] }
  0x19   :  { %1008 = vmatmul.msk.f32.gmra.mxu3 %vm96_vm1, %v1167_v11  ;;  %1016 = vmatmul.msk.f32.vlgmr.msrb.gmra.mxu2 %vm96_vm1, %v1172_v12  ;;  %v41_v48 = vld [vmem:[%s1500_s0 + $0x48] sm:$0xff]  ;;  %v59_v49 = vld [vmem:[%s1500_s0 + $0xd8] sm:$0xff]  ;;  %v78_v50 = vld [vmem:[%s1500_s0 + $0x170] sm:$0xff] }
  0x1a   :  { %328 = vmatpush.msra.mxu3 %v39_v36  ;;  %349 = vmatpush.msra.mxu0 %v72_v37  ;;  %v43_v51 = vld [vmem:[%s1500_s0 + $0x58] sm:$0xff]  ;;  %v92_v52 = vld [vmem:[%s1500_s0 + $0x1e0] sm:$0xf]  ;;  %v93_v53 = vld [vmem:[%s1500_s0 + $0x1e8] sm:$0xf] }
  0x1b   :  { %1010 = vmatmul.msk.f32.vlgmr.msrb.gmra.mxu0 %vm96_vm1, %v1172_v12  ;;  %1024 = vmatpush.msk.msra.mxu1 %vm103_vm0, %v89_v38  ;;  %v62_v54 = vld [vmem:[%s1500_s0 + $0xf0] sm:$0xff]  ;;  %v76_v55 = vld [vmem:[%s1500_s0 + $0x160] sm:$0xff]  ;;  %v95_v56 = vld [vmem:[%s1500_s0 + $0x1f8] sm:$0xf] }
  0x1c   :  { %396 = vmatpush.msra.mxu2 %v58_v39  ;;  %350 = vmatpush.msra.mxu0 %v56_v40  ;;  %v77_v57 = vld [vmem:[%s1500_s0 + $0x168] sm:$0xff]  ;;  %v46_v58 = vld [vmem:[%s1500_s0 + $0x70] sm:$0xff]  ;;  %v60_v59 = vld [vmem:[%s1500_s0 + $0xe0] sm:$0xff] }
  0x1d   :  { %372 = vmatpush.msra.mxu1 %v73_v41  ;;  %1030 = vmatpush.msk.msrb.mxu3 %vm103_vm0, %v91_v42  ;;  %v44_v60 = vld [vmem:[%s1500_s0 + $0x60] sm:$0xff]  ;;  %v61_v61 = vld [vmem:[%s1500_s0 + $0xe8] sm:$0xff]  ;;  %v79_v62 = vld [vmem:[%s1500_s0 + $0x178] sm:$0xff] }
  0x1e   :  { %397 = vmatpush.msra.mxu2 %v42_v43  ;;  %351 = vmatpush.msra.mxu0 %v40_v44  ;;  %v45_v63 = vld [vmem:[%s1500_s0 + $0x68] sm:$0xff]  ;;  %v63_v0 = vld [vmem:[%s1500_s0 + $0xf8] sm:$0xff]  ;;  %v552_v16 = vld [vmem:[%s1502_s2] sm:$0xff] }
  0x1f   :  { %373 = vmatpush.msra.mxu1 %v57_v45  ;;  %418 = vmatpush.msrb.mxu3 %v75_v46  ;;  %v47_v1 = vld [vmem:[%s1500_s0 + $0x78] sm:$0xff]  ;;  %v553_v14 = vld [vmem:[%s1502_s2 + $0x8] sm:$0xff]  ;;  %v554_v19 = vld [vmem:[%s1502_s2 + $0x10] sm:$0xff] }
  0x20   :  { %1014 = vmatmul.msk.f32.gmra.mxu1 %vm96_vm1, %v1167_v11  ;;  %1039 = vmatpush.msk.msrb.mxu2 %vm103_vm0, %v94_v47  ;;  %v555_v30 = vld [vmem:[%s1502_s2 + $0x18] sm:$0xff]  ;;  %v557_v35 = vld [vmem:[%s1502_s2 + $0x28] sm:$0xff]  ;;  %v556_v36 = vld [vmem:[%s1502_s2 + $0x20] sm:$0xff] }
  0x21   :  { %1017 = vmatmul.msk.f32.gmra.mxu2 %vm96_vm1, %v1167_v11  ;;  %1019 = vmatmul.msk.f32.vlgmr.msra.gmra.mxu3 %vm96_vm1, %v1172_v12  ;;  %v558_v39 = vld [vmem:[%s1502_s2 + $0x30] sm:$0xff] }
  0x22   :  { %374 = vmatpush.msra.mxu1 %v41_v48  ;;  %419 = vmatpush.msrb.mxu3 %v59_v49 }
  0x23   :  { %1011 = vmatmul.msk.f32.gmra.mxu0 %vm96_vm1, %v1167_v11  ;;  %487 = vmatpush.msrb.mxu2 %v78_v50  ;;  %v559_v50 = vld [vmem:[%s1502_s2 + $0x38] sm:$0xff] }
  0x24   :  { %420 = vmatpush.msrb.mxu3 %v43_v51  ;;  %1033 = vmatpush.msk.msrb.mxu0 %vm103_vm0, %v92_v52 }
  0x25   :  { %1036 = vmatpush.msk.msrb.mxu1 %vm103_vm0, %v93_v53  ;;  %488 = vmatpush.msrb.mxu2 %v62_v54 }
  0x26   :  { %441 = vmatpush.msrb.mxu0 %v76_v55  ;;  %1042 = vmatpush.msk.msra.mxu3 %vm103_vm0, %v95_v56  ;;  %v561_v55 = vld [vmem:[%s1502_s2 + $0x48] sm:$0xff]  ;;  %v560_v56 = vld [vmem:[%s1502_s2 + $0x40] sm:$0xff] }
  0x27   :  { %464 = vmatpush.msrb.mxu1 %v77_v57  ;;  %489 = vmatpush.msrb.mxu2 %v46_v58 }
  0x28   :  { %1025 = vmatmul.msk.f32.vlgmr.msra.gmra.mxu1 %vm96_vm1, %v1172_v12  ;;  %442 = vmatpush.msrb.mxu0 %v60_v59  ;;  %v562_v59 = vld [vmem:[%s1502_s2 + $0x50] sm:$0xff] }
  0x29   :  { %1020 = vmatmul.msk.f32.gmra.mxu3 %vm96_vm1, %v1167_v11  ;;  %1028 = vmatmul.msk.f32.vlgmr.msra.gmra.mxu2 %vm96_vm1, %v1172_v12 }
  0x2a   :  { %443 = vmatpush.msrb.mxu0 %v44_v60  ;;  %465 = vmatpush.msrb.mxu1 %v61_v61 }
  0x2b   :  { %1022 = vmatmul.msk.f32.vlgmr.msra.gmra.mxu0 %vm96_vm1, %v1172_v12  ;;  %510 = vmatpush.msra.mxu3 %v79_v62 }
  0x2c   :  { %466 = vmatpush.msrb.mxu1 %v45_v63 }
  0x2d   :  { %511 = vmatpush.msra.mxu3 %v63_v0 }
  0x2f   :  { %512 = vmatpush.msra.mxu3 %v47_v1 }
  0x30   :  { %1026 = vmatmul.msk.f32.gmra.mxu1 %vm96_vm1, %v1167_v11 }
  0x31   :  { %1029 = vmatmul.msk.f32.gmra.mxu2 %vm96_vm1, %v1167_v11  ;;  %1031 = vmatmul.msk.f32.vlgmr.msrb.gmra.mxu3 %vm96_vm1, %v1172_v12 }
  0x33   :  { %1023 = vmatmul.msk.f32.gmra.mxu0 %vm96_vm1, %v1167_v11 }
  0x38   :  { %1037 = vmatmul.msk.f32.vlgmr.msrb.gmra.mxu1 %vm96_vm1, %v1172_v12 }
  0x39   :  { %1032 = vmatmul.msk.f32.gmra.mxu3 %vm96_vm1, %v1167_v11  ;;  %1040 = vmatmul.msk.f32.vlgmr.msrb.gmra.mxu2 %vm96_vm1, %v1172_v12 }
  0x3b   :  { %1034 = vmatmul.msk.f32.vlgmr.msrb.gmra.mxu0 %vm96_vm1, %v1172_v12 }
  0x40   :  { %1038 = vmatmul.msk.f32.gmra.mxu1 %vm96_vm1, %v1167_v11 }
  0x41   :  { %1041 = vmatmul.msk.f32.gmra.mxu2 %vm96_vm1, %v1167_v11  ;;  %1043 = vmatmul.msk.f32.vlgmr.msra.gmra.mxu3 %vm96_vm1, %v1172_v12 }
  0x43   :  { %1035 = vmatmul.msk.f32.gmra.mxu0 %vm96_vm1, %v1167_v11 }
  0x49   :  { %1044 = vmatmul.msk.f32.gmra.mxu3 %vm96_vm1, %v1167_v11 }
  0x88   :  { %v169_v2 = vpop.f32.mrf.mxu0 }
  0x89   :  { %v520_v10 = vmax.f32 %v169_v2, 0.0 }
  0x8b   :  { %v192_v3 = vpop.f32.mrf.mxu1 }
  0x8c   :  { %v195_v4 = vpop.f32.mrf.mxu3  ;;  %v215_v5 = vpop.f32.mrf.mxu2  ;;  %v521_v7 = vmax.f32 %v192_v3, 0.0 }
  0x8d   :  { %v537_v6 = vmax.f32 %v195_v4, 0.0  ;;  %v522_v18 = vmax.f32 %v215_v5, 0.0 }
  0x8f   :  { %602 = vmatpush.xpose.msra.mxu1 %v537_v6  ;;  %v563_v6 = vld [vmem:[%s1502_s2 + $0x58] sm:$0xff] }
  0x90   :  { %v172_v8 = vpop.f32.mrf.mxu0 }
  0x91   :  { %v536_v9 = vmax.f32 %v172_v8, 0.0 }
  0x93   :  { %582 = vmatpush.xpose.msra.mxu0 %v536_v9  ;;  %603 = vmatpush.xpose.msra.mxu1 %v521_v7 }
  0x94   :  { %v218_v13 = vpop.f32.mrf.mxu2  ;;  %v238_v12 = vpop.f32.mrf.mxu3 }
  0x95   :  { %v538_v15 = vmax.f32 %v218_v13, 0.0  ;;  %v284_v11 = vpop.f32.mrf.mxu1  ;;  %v523_v27 = vmax.f32 %v238_v12, 0.0  ;;  %v564_v13 = vld [vmem:[%s1502_s2 + $0x60] sm:$0xff] }
  0x96   :  { %604 = vmatmul.f32.vlgmr.msra.gmra.mxu1 %v553_v14  ;;  %v525_v25 = vmax.f32 %v284_v11, 0.0  ;;  %v566_v14 = vld [vmem:[%s1502_s2 + $0x70] sm:$0xff] }
  0x97   :  { %583 = vmatpush.xpose.msra.mxu0 %v520_v10  ;;  %622 = vmatpush.xpose.msra.mxu2 %v538_v15  ;;  %v565_v10 = vld [vmem:[%s1502_s2 + $0x68] sm:$0xff] }
  0x98   :  { %v261_v17 = vpop.f32.mrf.mxu0 }
  0x99   :  { %v524_v29 = vmax.f32 %v261_v17, 0.0  ;;  %v567_v17 = vld [vmem:[%s1502_s2 + $0x78] sm:$0xff]  ;;  %s988_s2 = sshll.u32 %s1508_s8, 4  ;;  %s989_s2 = int_to_ptr.hbm [resolvable:$true] %s988_s2 }
  0x9a   :  { %584 = vmatmul.f32.vlgmr.msra.gmra.mxu0 %v552_v16 }
  0x9b   :  { %623 = vmatpush.xpose.msra.mxu2 %v522_v18 }
  0x9c   :  { %v241_v20 = vpop.f32.mrf.mxu3  ;;  %v307_v21 = vpop.f32.mrf.mxu2 }
  0x9d   :  { %v539_v22 = vmax.f32 %v241_v20, 0.0  ;;  %v287_v23 = vpop.f32.mrf.mxu1  ;;  %v526_v38 = vmax.f32 %v307_v21, 0.0 }
  0x9e   :  { %v541_v24 = vmax.f32 %v287_v23, 0.0  ;;  %624 = vmatmul.f32.vlgmr.msra.gmra.mxu2 %v554_v19 }
  0x9f   :  { %642 = vmatpush.xpose.msrb.mxu3 %v539_v22 }
  0xa0   :  { %v264_v26 = vpop.f32.mrf.mxu0  ;;  %682 = vmatpush.xpose.msrb.mxu1 %v541_v24 }
  0xa1   :  { %v540_v28 = vmax.f32 %v264_v26, 0.0 }
  0xa3   :  { %643 = vmatpush.xpose.msrb.mxu3 %v523_v27  ;;  %662 = vmatpush.xpose.msrb.mxu0 %v540_v28 }
  0xa4   :  { %v310_v31 = vpop.f32.mrf.mxu2  ;;  %v330_v32 = vpop.f32.mrf.mxu3  ;;  %683 = vmatpush.xpose.msrb.mxu1 %v525_v25 }
  0xa5   :  { %v542_v33 = vmax.f32 %v310_v31, 0.0  ;;  %v376_v34 = vpop.f32.mrf.mxu1  ;;  %v527_v47 = vmax.f32 %v330_v32, 0.0  ;;  %v889_v31 = vld [vmem:[%s1503_s3 + $0x8] sm:$0xff] }
  0xa6   :  { %644 = vmatmul.f32.vlgmr.msrb.gmra.mxu3 %v555_v30  ;;  %v529_v45 = vmax.f32 %v376_v34, 0.0 }
  0xa7   :  { %663 = vmatpush.xpose.msrb.mxu0 %v524_v29  ;;  %702 = vmatpush.xpose.msrb.mxu2 %v542_v33  ;;  %v888_v33 = vld [vmem:[%s1503_s3] sm:$0xff] }
  0xa8   :  { %v353_v37 = vpop.f32.mrf.mxu0  ;;  %684 = vmatmul.f32.vlgmr.msrb.gmra.mxu1 %v557_v35  ;;  %v926_v35 = vld [vmem:[%s1505_s5 + $0x38] sm:$0xff] }
  0xa9   :  { %v528_v49 = vmax.f32 %v353_v37, 0.0 }
  0xaa   :  { %664 = vmatmul.f32.vlgmr.msrb.gmra.mxu0 %v556_v36  ;;  %v925_v36 = vld [vmem:[%s1505_s5 + $0x30] sm:$0xff] }
  0xab   :  { %703 = vmatpush.xpose.msrb.mxu2 %v526_v38  ;;  %v924_v38 = vld [vmem:[%s1505_s5 + $0x28] sm:$0xff] }
  0xac   :  { %v333_v40 = vpop.f32.mrf.mxu3  ;;  %v399_v41 = vpop.f32.mrf.mxu2 }
  0xad   :  { %v543_v42 = vmax.f32 %v333_v40, 0.0  ;;  %v379_v43 = vpop.f32.mrf.mxu1  ;;  %v530_v58 = vmax.f32 %v399_v41, 0.0  ;;  %v923_v40 = vld [vmem:[%s1505_s5 + $0x20] sm:$0xff] }
  0xae   :  { %v545_v44 = vmax.f32 %v379_v43, 0.0  ;;  %704 = vmatmul.f32.vlgmr.msrb.gmra.mxu2 %v558_v39 }
  0xaf   :  { %722 = vmatpush.xpose.msra.mxu3 %v543_v42  ;;  %v922_v42 = vld [vmem:[%s1505_s5 + $0x18] sm:$0xff] }
  0xb0   :  { %v356_v46 = vpop.f32.mrf.mxu0  ;;  %762 = vmatpush.xpose.msra.mxu1 %v545_v44 }
  0xb1   :  { %v544_v48 = vmax.f32 %v356_v46, 0.0 }
  0xb3   :  { %723 = vmatpush.xpose.msra.mxu3 %v527_v47  ;;  %742 = vmatpush.xpose.msra.mxu0 %v544_v48 }
  0xb4   :  { %v402_v51 = vpop.f32.mrf.mxu2  ;;  %v422_v52 = vpop.f32.mrf.mxu3  ;;  %763 = vmatpush.xpose.msra.mxu1 %v529_v45 }
  0xb5   :  { %v546_v53 = vmax.f32 %v402_v51, 0.0  ;;  %v468_v54 = vpop.f32.mrf.mxu1  ;;  %v531_v3 = vmax.f32 %v422_v52, 0.0 }
  0xb6   :  { %724 = vmatmul.f32.vlgmr.msra.gmra.mxu3 %v559_v50  ;;  %v533_v1 = vmax.f32 %v468_v54, 0.0 }
  0xb7   :  { %743 = vmatpush.xpose.msra.mxu0 %v528_v49  ;;  %782 = vmatpush.xpose.msra.mxu2 %v546_v53 }
  0xb8   :  { %v445_v57 = vpop.f32.mrf.mxu0  ;;  %764 = vmatmul.f32.vlgmr.msra.gmra.mxu1 %v561_v55 }
  0xb9   :  { %v532_v5 = vmax.f32 %v445_v57, 0.0  ;;  %v920_v57 = vld [vmem:[%s1505_s5 + $0x8] sm:$0xff] }
  0xba   :  { %744 = vmatmul.f32.vlgmr.msra.gmra.mxu0 %v560_v56  ;;  %v921_v56 = vld [vmem:[%s1505_s5 + $0x10] sm:$0xff] }
  0xbb   :  { %783 = vmatpush.xpose.msra.mxu2 %v530_v58  ;;  %v919_v58 = vld [vmem:[%s1505_s5] sm:$0xff]  ;;  %s1081_s5 = smov [#allocation2]  }
  0xbc   :  { %v425_v60 = vpop.f32.mrf.mxu3  ;;  %v491_v61 = vpop.f32.mrf.mxu2 }
  0xbd   :  { %v547_v62 = vmax.f32 %v425_v60, 0.0  ;;  %v471_v63 = vpop.f32.mrf.mxu1  ;;  %v534_v12 = vmax.f32 %v491_v61, 0.0 }
  0xbe   :  { %v549_v0 = vmax.f32 %v471_v63, 0.0  ;;  %784 = vmatmul.f32.vlgmr.msra.gmra.mxu2 %v562_v59  ;;  %v1053_v59 = vld [vmem:[%s1504_s4] ss:$0 sm:$0xff]  ;;  %s986_s4 = sshll.u32 %s1081_s5, 4  ;;  %s987_s4 = int_to_ptr.vmem [resolvable:$true] %s986_s4 }
  0xbf   :  { %802 = vmatpush.xpose.msrb.mxu3 %v547_v62  ;;  %v1054_v63 = vld [vmem:[%s1506_s6] ss:$0 sm:$0xff] }
  0xc0   :  { %v448_v2 = vpop.f32.mrf.mxu0  ;;  %842 = vmatpush.xpose.msrb.mxu1 %v549_v0 }
  0xc1   :  { %v548_v4 = vmax.f32 %v448_v2, 0.0  ;;  %v955_v2 = vld [vmem:[%s1507_s7] sm:$0x3] }
  0xc3   :  { %803 = vmatpush.xpose.msrb.mxu3 %v531_v3  ;;  %822 = vmatpush.xpose.msrb.mxu0 %v548_v4 }
  0xc4   :  { %v494_v7 = vpop.f32.mrf.mxu2  ;;  %v514_v8 = vpop.f32.mrf.mxu3  ;;  %843 = vmatpush.xpose.msrb.mxu1 %v533_v1 }
  0xc5   :  { %v550_v9 = vmax.f32 %v494_v7, 0.0  ;;  %v535_v16 = vmax.f32 %v514_v8, 0.0 }
  0xc6   :  { %804 = vmatmul.f32.vlgmr.msrb.gmra.mxu3 %v563_v6 }
  0xc7   :  { %823 = vmatpush.xpose.msrb.mxu0 %v532_v5  ;;  %862 = vmatpush.xpose.msrb.mxu2 %v550_v9 }
  0xc8   :  { %844 = vmatmul.f32.vlgmr.msrb.gmra.mxu1 %v565_v10 }
  0xc9   :  { %943 = vmatpush.msra.mxu1 %v926_v35 }
  0xca   :  { %824 = vmatmul.f32.vlgmr.msrb.gmra.mxu0 %v564_v13 }
  0xcb   :  { %863 = vmatpush.xpose.msrb.mxu2 %v534_v12  ;;  %912 = vmatpush.msra.mxu0 %v889_v31 }
  0xcc   :  { %v517_v15 = vpop.f32.mrf.mxu3  ;;  %944 = vmatpush.msra.mxu1 %v925_v36 }
  0xcd   :  { %v551_v11 = vmax.f32 %v517_v15, 0.0  ;;  %913 = vmatpush.msra.mxu0 %v888_v33 }
  0xce   :  { %864 = vmatmul.f32.vlgmr.msrb.gmra.mxu2 %v566_v14  ;;  %945 = vmatpush.msra.mxu1 %v924_v38 }
  0xcf   :  { %882 = vmatpush.xpose.msra.mxu3 %v551_v11 }
  0xd0   :  { %946 = vmatpush.msra.mxu1 %v923_v40 }
  0xd2   :  { %947 = vmatpush.msra.mxu1 %v922_v42 }
  0xd3   :  { %883 = vmatpush.xpose.msra.mxu3 %v535_v16 }
  0xd4   :  { %948 = vmatpush.msra.mxu1 %v921_v56 }
  0xd6   :  { %884 = vmatmul.f32.vlgmr.msra.gmra.mxu3 %v567_v17  ;;  %949 = vmatpush.msra.mxu1 %v920_v57 }
  0xd8   :  { %950 = vmatpush.msra.mxu1 %v919_v58 }
 0x113   :  { %v605_v18 = vpop.f32.mrf.mxu1 }
 0x117   :  { %v585_v19 = vpop.f32.mrf.mxu0 }
 0x118   :  { %v606_v20 = vadd.f32 %v605_v18, %v585_v19 }
 0x121   :  { %v625_v21 = vpop.f32.mrf.mxu2 }
 0x122   :  { %v626_v22 = vadd.f32 %v625_v21, %v606_v20 }
 0x125   :  { %v685_v27 = vpop.f32.mrf.mxu1 }
 0x127   :  { %v665_v25 = vpop.f32.mrf.mxu0 }
 0x129   :  { %v645_v23 = vpop.f32.mrf.mxu3 }
 0x12a   :  { %v646_v24 = vadd.f32 %v645_v23, %v626_v22 }
 0x12c   :  { %v666_v26 = vadd.f32 %v665_v25, %v646_v24 }
 0x12e   :  { %v686_v28 = vadd.f32 %v685_v27, %v666_v26 }
 0x131   :  { %v705_v29 = vpop.f32.mrf.mxu2 }
 0x132   :  { %v706_v30 = vadd.f32 %v705_v29, %v686_v28 }
 0x135   :  { %v765_v41 = vpop.f32.mrf.mxu1 }
 0x137   :  { %v745_v37 = vpop.f32.mrf.mxu0 }
 0x139   :  { %v725_v32 = vpop.f32.mrf.mxu3 }
 0x13a   :  { %v726_v34 = vadd.f32 %v725_v32, %v706_v30 }
 0x13c   :  { %v746_v39 = vadd.f32 %v745_v37, %v726_v34 }
 0x13e   :  { %v766_v43 = vadd.f32 %v765_v41, %v746_v39 }
 0x141   :  { %v785_v44 = vpop.f32.mrf.mxu2 }
 0x142   :  { %v786_v45 = vadd.f32 %v785_v44, %v766_v43 }
 0x145   :  { %v845_v50 = vpop.f32.mrf.mxu1 }
 0x147   :  { %v825_v48 = vpop.f32.mrf.mxu0 }
 0x149   :  { %v805_v46 = vpop.f32.mrf.mxu3 }
 0x14a   :  { %v806_v47 = vadd.f32 %v805_v46, %v786_v45 }
 0x14c   :  { %v826_v49 = vadd.f32 %v825_v48, %v806_v47 }
 0x14e   :  { %v846_v51 = vadd.f32 %v845_v50, %v826_v49 }
 0x151   :  { %v865_v52 = vpop.f32.mrf.mxu2 }
 0x152   :  { %v866_v53 = vadd.f32 %v865_v52, %v846_v51 }
 0x159   :  { %v885_v54 = vpop.f32.mrf.mxu3 }
 0x15a   :  { %v886_v55 = vadd.f32 %v885_v54, %v866_v53 }
 0x15c   :  { %1045 = vmatmul.msk.f32.vlgmr.msra.gmra.mxu0 %vm894_vm2, %v886_v55 }
 0x1d9   :  { %v915_v60 = vpop.f32.mrf.mxu0 }
 0x1da   :  { %v916_v61 = vadd.f32 %v1053_v59, %v915_v60 }
 0x1dc   :  { %v918_v62 = vmax.f32 %v916_v61, 0.0 }
 0x1de   :  { %1046 = vmatmul.msk.f32.vlgmr.msra.gmra.mxu1 %vm931_vm3, %v918_v62 }
 0x25b   :  { %v952_v0 = vpop.f32.mrf.mxu1 }
 0x25c   :  { %v953_v1 = vadd.f32 %v1054_v63, %v952_v0 }
 0x25e   :  { %975 = vmatpush.msra.mxu2 %v953_v1 }
 0x25f   :  { %1047 = vmatmul.msk.f32.vlgmr.msra.gmra.mxu2 %vm956_vm4, %v955_v2 }
 0x2e2   :  { %v977_v3 = vpop.f32.mrf.mxu2 }
 0x2e3   :  { %980 = vst [vmem:[#allocation2] sm:$0x3] %v977_v3 }
 0x2e4   :  { %991 = dma.vmem_to_hbm [thread:$0]  %s987_s4, 32, %s989_s2, [#allocation3]  }
 0x2e5   :  { %1079 = dma.done.wait [#allocation3], 32  }
 0x2e6   :  { %1080 = vsyncadd [#allocation3], 4294967264 }
 0x2e7   :  { %996 = vsyncpa [#allocation3], 1 }

</bundles_post_ra>
